<compile_context>
chip_gen: v7x
topology: tpu7x:2x2x1
jax: 0.10.0
libtpu: 0.0.40
codegen_flags: <defaults>
</compile_context>

<pallas_src>
import functools

import jax
import jax.numpy as jnp
from jax import lax
from jax.experimental import pallas as pl
from jax.experimental.pallas import tpu as pltpu


def _round_up(x, m):
    return (x + m - 1) // m * m


@functools.lru_cache(maxsize=1)
def _num_batch_splits():
    """>= 2 grid steps on 2-TensorCore chips (v7x); 1 big block elsewhere."""
    try:
        kind = jax.devices()[0].device_kind.lower()
    except Exception:
        return 1
    return 2 if ("v7" in kind or "7x" in kind) else 1


# ----------------------------------------------------------------------------
# Pallas kernel: deferred-normalization cosine-sim matmul + segmented top-1
# ----------------------------------------------------------------------------
def _cos_sim_top1_kernel(q_ref, k_ref, invk_ref, *out_refs,
                         n_valid, seg_width, n_seg, emit_cos):
    q_bf = q_ref[...]                       # (TB, D)    bfloat16
    k_dp = k_ref[...]                       # (D, Spad)  bfloat16, pre-transposed
    inv_k = invk_ref[...]                   # (1, Spad)  float32, precomputed

    # Inverse query norm from the (upcast) bf16 query.
    # 1/max(||q||,1e-12) == rsqrt(max(sum(q^2), 1e-24)); rsqrt -> EUP slot.
    q = q_bf.astype(jnp.float32)
    q_sq = jnp.sum(q * q, axis=-1, keepdims=True)            # (TB, 1)
    inv_q = lax.rsqrt(jnp.maximum(q_sq, 1e-24))               # (TB, 1)

    # MXU-native NN contraction: bf16 operands, f32 accumulation, no transpose.
    s = lax.dot_general(q_bf, k_dp,
                        dimension_numbers=(((1,), (0,)), ((), ())),
                        preferred_element_type=jnp.float32)   # (TB, Spad)

    # Post-matmul normalization (tiny: TB*Spad multiplies).
    cos = s * inv_q * inv_k                                   # (TB, Spad)

    if emit_cos:
        cos_ref, idx_ref = out_refs
        cos_ref[...] = cos                                    # lane-dense store
    else:
        (idx_ref,) = out_refs                                 # eval: no cos write

    # Per-pool-segment top-1 over real entries only (padded cols -> -inf).
    tops = []
    for sgi in range(n_seg):                                  # static, lane-aligned slices
        blk = cos[:, sgi * seg_width:(sgi + 1) * seg_width]   # (TB, seg_width)
        col = lax.broadcasted_iota(jnp.int32, blk.shape, 1)
        blk_m = jnp.where(col < n_valid, blk, -jnp.inf)
        mx = jnp.max(blk_m, axis=-1, keepdims=True)
        # torch.topk(k=1) tie-break: first index among maxima.
        cand = jnp.where(blk_m >= mx, col, seg_width)
        tops.append(jnp.min(cand, axis=-1, keepdims=True).astype(jnp.int32))
    idx = jnp.concatenate(tops, axis=-1)                      # (TB, n_seg)
    idx_ref[...] = jnp.broadcast_to(idx[:, :, None], idx_ref.shape)  # lane-dense


def cos_sim_top1(q_bf16, k_dp_bf16, inv_knorm, pool_size, *,
                 n_seg, seg_width, want_cos=True, block_b=1024):
    """Fused cosine similarity + per-pool top-1 over concatenated key pools.

    Args:
      q_bf16:     (B, D) bfloat16 query features.
      k_dp_bf16:  (D, n_seg*seg_width) bfloat16 pre-transposed keys, each pool
                  zero-padded along the pool axis to seg_width (mult of 128).
      inv_knorm:  (1, n_seg*seg_width) float32, 1 / max(||K_row||, 1e-12).
      pool_size:  number of real (unpadded) entries per pool.
      want_cos:   if False (eval), skip the cos output / HBM writeback.

    Returns:
      (cos or None, idx): cos (B, n_seg*seg_width) float32, idx (B, n_seg) int32.
    """
    B, D = q_bf16.shape
    S_pad = k_dp_bf16.shape[1]
    assert S_pad == n_seg * seg_width

    # v7x: split batch across >= 2 "parallel" grid steps (2 TCs); v5e/v6e: one
    # large block to avoid per-step overhead on a launch/DMA-latency-bound kernel.
    TB = min(_round_up(pl.cdiv(B, _num_batch_splits()), 8), block_b)
    B_pad = _round_up(B, TB)
    if B_pad != B:
        q_bf16 = jnp.pad(q_bf16, ((0, B_pad - B), (0, 0)))

    kernel = functools.partial(_cos_sim_top1_kernel, n_valid=pool_size,
                               seg_width=seg_width, n_seg=n_seg,
                               emit_cos=want_cos)

    out_shape = []
    out_specs = []
    if want_cos:
        out_shape.append(jax.ShapeDtypeStruct((B_pad, S_pad), jnp.float32))
        out_specs.append(pl.BlockSpec((TB, S_pad), lambda i: (i, 0)))
    out_shape.append(jax.ShapeDtypeStruct((B_pad, n_seg, 128), jnp.int32))
    out_specs.append(pl.BlockSpec((TB, n_seg, 128), lambda i: (i, 0, 0)))

    outs = pl.pallas_call(
        kernel,
        out_shape=tuple(out_shape),
        grid=(B_pad // TB,),
        in_specs=[
            pl.BlockSpec((TB, D), lambda i: (i, 0)),
            pl.BlockSpec((D, S_pad), lambda i: (0, 0)),
            pl.BlockSpec((1, S_pad), lambda i: (0, 0)),
        ],
        out_specs=tuple(out_specs),
        compiler_params=pltpu.CompilerParams(
            dimension_semantics=("parallel",)),
    )(q_bf16, k_dp_bf16, inv_knorm)

    if not isinstance(outs, (tuple, list)):
        outs = (outs,)
    if want_cos:
        cos, idx = outs
        return cos[:B], idx[:B, :, 0]
    (idx,) = outs
    return None, idx[:B, :, 0]


# ----------------------------------------------------------------------------
# DualPrompt module (parameters + forward glue in plain JAX)
# ----------------------------------------------------------------------------
class DualPromptJax:
    def __init__(self, emb_d, n_tasks, prompt_param, key_dim=768, seed=0):
        self.task_count = 0
        self.emb_d = emb_d
        self.key_d = key_dim
        self.n_tasks = n_tasks
        # _init_smart
        self.top_k = 1
        self.task_id_bootstrap = True
        self.g_layers = [0, 1]
        self.e_layers = [2, 3, 4]
        self.g_p_length = int(prompt_param[2])
        self.e_p_length = int(prompt_param[1])
        self.e_pool_size = int(prompt_param[0])

        # Deterministic parameter init (tensor_prompt: uniform_ in [0,1)).
        key = jax.random.PRNGKey(seed)
        self.params = {}
        for g in self.g_layers:
            key, sub = jax.random.split(key)
            self.params[f"g_p_{g}"] = jax.random.uniform(
                sub, (self.g_p_length, emb_d), dtype=jnp.float32)
        for e in self.e_layers:
            key, k1 = jax.random.split(key)
            key, k2 = jax.random.split(key)
            self.params[f"e_p_{e}"] = jax.random.uniform(
                k1, (self.e_pool_size, self.e_p_length, emb_d), dtype=jnp.float32)
            self.params[f"e_k_{e}"] = jax.random.uniform(
                k2, (self.e_pool_size, self.key_d), dtype=jnp.float32)

        self._build_key_cache()
        self._q_cache = None   # fused-similarity cache keyed on x_querry identity

    def _build_key_cache(self):
        # Fused, kernel-ready frozen keys:
        #   * per-layer pool axis zero-padded to a lane-dense multiple of 128
        #     (EXACT-ZERO padding invariant is relied on by the kernel),
        #   * pre-transposed to (D, n_e*P_pad) bf16 for the MXU-native NN
        #     contraction (one offline transpose, none per call),
        #   * precomputed f32 inverse key norms (F.normalize eps=1e-12).
        # TODO(synk): rebuild this cache whenever e_k_* changes (optimizer step).
        self._p_pad = max(128, _round_up(self.e_pool_size, 128))
        self._seg_of = {l: i for i, l in enumerate(self.e_layers)}
        k_cols, inv_cols = [], []
        for e in self.e_layers:
            k = self.params[f"e_k_{e}"]                                  # (P, D)
            k_pad = jnp.pad(k, ((0, self._p_pad - self.e_pool_size), (0, 0)))
            sumsq = jnp.sum(k_pad * k_pad, axis=-1)                      # (Ppad,)
            inv_cols.append(lax.rsqrt(jnp.maximum(sumsq, 1e-24)))
            k_cols.append(k_pad.T)                                       # (D, Ppad)
        self._e_k_fused_dp = jnp.concatenate(k_cols, axis=1).astype(jnp.bfloat16)
        self._e_inv_knorm = jnp.concatenate(inv_cols).reshape(1, -1).astype(jnp.float32)

    def _e_similarities(self, x_querry, need_cos):
        # One fused pallas_call covers ALL e-layers for a given query; the
        # result is reused across per-layer forward() calls on the same
        # x_querry (amortizes launch + q DMA 3x).
        # TODO(synk): identity-based caching targets eager use; under jit,
        # wrap the whole multi-layer forward instead.
        c = self._q_cache
        if (c is not None and c["x"] is x_querry
                and (c["cos"] is not None or not need_cos)):
            return c
        q_bf = x_querry.astype(jnp.bfloat16)       # halve the dominant q DMA
        cos_all, idx_all = cos_sim_top1(
            q_bf, self._e_k_fused_dp, self._e_inv_knorm, self.e_pool_size,
            n_seg=len(self.e_layers), seg_width=self._p_pad,
            want_cos=need_cos)
        c = {"x": x_querry, "cos": cos_all, "idx": idx_all}
        self._q_cache = c
        return c

    def process_task_count(self):
        self.task_count += 1

    def forward(self, x_querry, l, x_block, train=False, task_id=None):
        B = x_querry.shape[0]
        e_valid = False
        g_valid = False
        loss = 0
        Ek = Ev = Gk = Gv = None

        if l in self.e_layers:
            e_valid = True
            p = self.params[f"e_p_{l}"]
            seg = self._seg_of[l]
            need_cos = bool(train)            # eval only consumes top-1 indices
            sim = self._e_similarities(x_querry, need_cos)
            k_idx = sim["idx"][:, seg:seg + 1]                         # (B, 1)
            cos_sim = None
            if need_cos:
                c0 = seg * self._p_pad
                cos_sim = sim["cos"][:, c0:c0 + self.e_pool_size]      # (B, P)
            i = self.e_p_length // 2
            if train and self.task_id_bootstrap:
                loss = jnp.sum(1.0 - cos_sim[:, task_id])
                P_ = jnp.broadcast_to(p[task_id][None, :, :],
                                      (B, self.e_p_length, self.emb_d))
                Ek = P_[:, :i, :].reshape((B, -1, self.emb_d))
                Ev = P_[:, i:, :].reshape((B, -1, self.emb_d))
            else:
                if train:
                    # Mirrors torch's cos_sim[:, k_idx] advanced indexing.
                    loss = jnp.sum(1.0 - cos_sim[:, k_idx])
                P_ = jnp.take(p, k_idx, axis=0)          # (B, top_k, L, emb_d)
                Ek = P_[:, :, :i, :].reshape((B, -1, self.emb_d))
                Ev = P_[:, :, i:, :].reshape((B, -1, self.emb_d))

        if l in self.g_layers:
            g_valid = True
            j = self.g_p_length // 2
            p = self.params[f"g_p_{l}"]
            P_ = jnp.broadcast_to(p[None, :, :], (B, self.g_p_length, self.emb_d))
            Gk = P_[:, :j, :]
            Gv = P_[:, j:, :]

        if e_valid and g_valid:
            p_return = [jnp.concatenate((Ek, Gk), axis=1),
                        jnp.concatenate((Ev, Gv), axis=1)]
        elif e_valid:
            p_return = [Ek, Ev]
        elif g_valid:
            p_return = [Gk, Gv]
            loss = 0
        else:
            p_return = None
            loss = 0

        if train:
            return p_return, loss, x_block
        else:
            return p_return, 0, x_block


# ----------------------------------------------------------------------------
if __name__ == "__main__":
    # Small, module-consistent shapes.
    B = 2
    emb_d = 32
    key_d = 32
    n_tasks = 4
    e_pool_size, e_p_length, g_p_length = 8, 8, 6
    prompt_param = [e_pool_size, e_p_length, g_p_length]

    model = DualPromptJax(emb_d, n_tasks, prompt_param, key_dim=key_d, seed=0)

    rng = jax.random.PRNGKey(0)
    r1, r2 = jax.random.split(rng)
    x_querry = jax.random.normal(r1, (B, key_d), dtype=jnp.float32)
    x_block = jax.random.normal(r2, (B, 8, emb_d), dtype=jnp.float32)

    # --- fused kernel vs. pure-JAX reference for the hot path ---
    cos_all, idx_all = cos_sim_top1(
        x_querry.astype(jnp.bfloat16), model._e_k_fused_dp, model._e_inv_knorm,
        e_pool_size, n_seg=len(model.e_layers), seg_width=model._p_pad,
        want_cos=True)
    jax.block_until_ready(cos_all)
    qn = x_querry / jnp.maximum(
        jnp.linalg.norm(x_querry, axis=1, keepdims=True), 1e-12)
    for l in model.e_layers:
        s = model._seg_of[l]
        cos_k = cos_all[:, s * model._p_pad:s * model._p_pad + e_pool_size]
        K = model.params[f"e_k_{l}"]
        kn = K / jnp.maximum(jnp.linalg.norm(K, axis=1, keepdims=True), 1e-12)
        cos_ref = qn @ kn.T
        assert jnp.allclose(cos_k, cos_ref, atol=2e-2, rtol=2e-2), f"cos mismatch l={l}"
        assert jnp.array_equal(idx_all[:, s], jnp.argmax(cos_k, axis=1)), f"top1 mismatch l={l}"

    # e-layer path, eval (idx-only kernel variant: no cos writeback).
    p_ret_e, loss_e, xb_e = model.forward(x_querry, l=2, x_block=x_block, train=False)
    jax.block_until_ready(p_ret_e[0])
    jax.block_until_ready(p_ret_e[1])
    assert p_ret_e[0].shape == (B, e_p_length // 2, emb_d)
    assert p_ret_e[1].shape == (B, e_p_length // 2, emb_d)

    # e-layer path, train mode with task_id bootstrap (loss uses kernel cos_sim).
    p_ret_t, loss_t, _ = model.forward(x_querry, l=3, x_block=x_block,
                                       train=True, task_id=1)
    jax.block_until_ready(loss_t)

    # g-layer path (plain broadcast glue).
    p_ret_g, loss_g, xb_g = model.forward(x_querry, l=0, x_block=x_block, train=False)
    jax.block_until_ready(p_ret_g[0])
    assert p_ret_g[0].shape == (B, g_p_length // 2, emb_d)

    print("KERNEL_OK")
</pallas_src>

<mosaic_0001>
module attributes {stable_mosaic.version = 11 : i64} {
  func.func @_cos_sim_top1_kernel(%arg0: i32, %arg1: memref<8x32xbf16, #tpu.memory_space<vmem>>, %arg2: memref<32x384xbf16, #tpu.memory_space<vmem>>, %arg3: memref<1x384xf32, #tpu.memory_space<vmem>>, %arg4: memref<8x384xf32, #tpu.memory_space<vmem>>, %arg5: memref<8x3x128xi32, #tpu.memory_space<vmem>>) attributes {dimension_semantics = [#tpu.dimension_semantics<parallel>], iteration_bounds = array<i64: 1>, scalar_prefetch = 0 : i64, scratch_operands = 0 : i64, tpu.core_type = #tpu.core_type<tc>, window_params = [{transform_indices = @transform_0, window_bounds = array<i64: 8, 32>}, {pipeline_mode = #tpu.pipeline_mode<synchronous>, transform_indices = @transform_1, window_bounds = array<i64: 32, 384>}, {pipeline_mode = #tpu.pipeline_mode<synchronous>, transform_indices = @transform_2, window_bounds = array<i64: 1, 384>}, {transform_indices = @transform_3, window_bounds = array<i64: 8, 384>}, {transform_indices = @transform_4, window_bounds = array<i64: 8, 3, 128>}]} {
    %c0 = arith.constant 0 : index
    %c0_0 = arith.constant 0 : index
    %0 = vector.load %arg1[%c0, %c0_0] : memref<8x32xbf16, #tpu.memory_space<vmem>>, vector<8x32xbf16>
    %c0_1 = arith.constant 0 : index
    %c0_2 = arith.constant 0 : index
    %1 = vector.load %arg2[%c0_1, %c0_2] : memref<32x384xbf16, #tpu.memory_space<vmem>>, vector<32x384xbf16>
    %c0_3 = arith.constant 0 : index
    %c0_4 = arith.constant 0 : index
    %2 = vector.load %arg3[%c0_3, %c0_4] : memref<1x384xf32, #tpu.memory_space<vmem>>, vector<1x384xf32>
    %3 = arith.extf %0 : vector<8x32xbf16> to vector<8x32xf32>
    %4 = arith.mulf %3, %3 : vector<8x32xf32>
    %cst = arith.constant dense<0.000000e+00> : vector<8xf32>
    %5 = vector.multi_reduction <add>, %4, %cst [1] : vector<8x32xf32> to vector<8xf32>
    %6 = vector.shape_cast %5 : vector<8xf32> to vector<8x1xf32>
    %cst_5 = arith.constant 1.000000e-24 : f32
    %7 = vector.broadcast %cst_5 : f32 to vector<8x1xf32>
    %8 = arith.maximumf %6, %7 : vector<8x1xf32>
    %9 = math.rsqrt %8 : vector<8x1xf32>
    %cst_6 = arith.constant dense<0.000000e+00> : vector<8x384xf32>
    %10 = tpu.matmul %0, %1, %cst_6 {dimension_numbers = #tpu.dot_dimension_numbers<[1], [0], [0], [1], [0, 0, 1, 1], [], []>} : vector<8x32xbf16>, vector<32x384xbf16>, vector<8x384xf32> -> vector<8x384xf32>
    %11 = vector.broadcast %9 : vector<8x1xf32> to vector<8x384xf32>
    %12 = arith.mulf %10, %11 : vector<8x384xf32>
    %13 = vector.broadcast %2 : vector<1x384xf32> to vector<8x384xf32>
    %14 = arith.mulf %12, %13 : vector<8x384xf32>
    %c0_7 = arith.constant 0 : index
    %c0_8 = arith.constant 0 : index
    %15 = vector.load %arg4[%c0_7, %c0_8] : memref<8x384xf32, #tpu.memory_space<vmem>>, vector<8x384xf32>
    tpu.vector_store %arg4[%c0_7, %c0_8], %14 {strides = array<i32>} : memref<8x384xf32, #tpu.memory_space<vmem>>, vector<8x384xf32>,
    %16 = vector.extract_strided_slice %14 {offsets = [0, 0], sizes = [8, 128], strides = [1, 1]} : vector<8x384xf32> to vector<8x128xf32>
    %17 = tpu.iota {dimensions = array<i32: 1>} : vector<8x128xi32>
    %c8_i32 = arith.constant 8 : i32
    %18 = vector.broadcast %c8_i32 : i32 to vector<8x128xi32>
    %19 = arith.cmpi slt, %17, %18 : vector<8x128xi32>
    %cst_9 = arith.constant 0xFF800000 : f32
    %20 = vector.broadcast %cst_9 : f32 to vector<8x128xf32>
    %21 = arith.select %19, %16, %20 : vector<8x128xi1>, vector<8x128xf32>
    %cst_10 = arith.constant dense<0xFF800000> : vector<8xf32>
    %22 = vector.multi_reduction <maximumf>, %21, %cst_10 [1] : vector<8x128xf32> to vector<8xf32>
    %23 = vector.shape_cast %22 : vector<8xf32> to vector<8x1xf32>
    %24 = vector.broadcast %23 : vector<8x1xf32> to vector<8x128xf32>
    %25 = arith.cmpf oge, %21, %24 : vector<8x128xf32>
    %c128_i32 = arith.constant 128 : i32
    %26 = vector.broadcast %c128_i32 : i32 to vector<8x128xi32>
    %27 = arith.select %25, %17, %26 : vector<8x128xi1>, vector<8x128xi32>
    %cst_11 = arith.constant dense<2147483647> : vector<8xi32>
    %28 = vector.multi_reduction <minsi>, %27, %cst_11 [1] : vector<8x128xi32> to vector<8xi32>
    %29 = vector.shape_cast %28 : vector<8xi32> to vector<8x1xi32>
    %30 = vector.extract_strided_slice %14 {offsets = [0, 128], sizes = [8, 128], strides = [1, 1]} : vector<8x384xf32> to vector<8x128xf32>
    %31 = tpu.iota {dimensions = array<i32: 1>} : vector<8x128xi32>
    %c8_i32_12 = arith.constant 8 : i32
    %32 = vector.broadcast %c8_i32_12 : i32 to vector<8x128xi32>
    %33 = arith.cmpi slt, %31, %32 : vector<8x128xi32>
    %cst_13 = arith.constant 0xFF800000 : f32
    %34 = vector.broadcast %cst_13 : f32 to vector<8x128xf32>
    %35 = arith.select %33, %30, %34 : vector<8x128xi1>, vector<8x128xf32>
    %cst_14 = arith.constant dense<0xFF800000> : vector<8xf32>
    %36 = vector.multi_reduction <maximumf>, %35, %cst_14 [1] : vector<8x128xf32> to vector<8xf32>
    %37 = vector.shape_cast %36 : vector<8xf32> to vector<8x1xf32>
    %38 = vector.broadcast %37 : vector<8x1xf32> to vector<8x128xf32>
    %39 = arith.cmpf oge, %35, %38 : vector<8x128xf32>
    %c128_i32_15 = arith.constant 128 : i32
    %40 = vector.broadcast %c128_i32_15 : i32 to vector<8x128xi32>
    %41 = arith.select %39, %31, %40 : vector<8x128xi1>, vector<8x128xi32>
    %cst_16 = arith.constant dense<2147483647> : vector<8xi32>
    %42 = vector.multi_reduction <minsi>, %41, %cst_16 [1] : vector<8x128xi32> to vector<8xi32>
    %43 = vector.shape_cast %42 : vector<8xi32> to vector<8x1xi32>
    %44 = vector.extract_strided_slice %14 {offsets = [0, 256], sizes = [8, 128], strides = [1, 1]} : vector<8x384xf32> to vector<8x128xf32>
    %45 = tpu.iota {dimensions = array<i32: 1>} : vector<8x128xi32>
    %c8_i32_17 = arith.constant 8 : i32
    %46 = vector.broadcast %c8_i32_17 : i32 to vector<8x128xi32>
    %47 = arith.cmpi slt, %45, %46 : vector<8x128xi32>
    %cst_18 = arith.constant 0xFF800000 : f32
    %48 = vector.broadcast %cst_18 : f32 to vector<8x128xf32>
    %49 = arith.select %47, %44, %48 : vector<8x128xi1>, vector<8x128xf32>
    %cst_19 = arith.constant dense<0xFF800000> : vector<8xf32>
    %50 = vector.multi_reduction <maximumf>, %49, %cst_19 [1] : vector<8x128xf32> to vector<8xf32>
    %51 = vector.shape_cast %50 : vector<8xf32> to vector<8x1xf32>
    %52 = vector.broadcast %51 : vector<8x1xf32> to vector<8x128xf32>
    %53 = arith.cmpf oge, %49, %52 : vector<8x128xf32>
    %c128_i32_20 = arith.constant 128 : i32
    %54 = vector.broadcast %c128_i32_20 : i32 to vector<8x128xi32>
    %55 = arith.select %53, %45, %54 : vector<8x128xi1>, vector<8x128xi32>
    %cst_21 = arith.constant dense<2147483647> : vector<8xi32>
    %56 = vector.multi_reduction <minsi>, %55, %cst_21 [1] : vector<8x128xi32> to vector<8xi32>
    %57 = vector.shape_cast %56 : vector<8xi32> to vector<8x1xi32>
    %58 = tpu.concatenate %29, %43, %57 in 1 : vector<8x1xi32>, vector<8x1xi32>, vector<8x1xi32> -> vector<8x3xi32>
    %59 = vector.shape_cast %58 : vector<8x3xi32> to vector<8x3x1xi32>
    %60 = vector.shape_cast %59 : vector<8x3x1xi32> to vector<8x3x1xi32>
    %61 = vector.broadcast %60 : vector<8x3x1xi32> to vector<8x3x128xi32>
    %c0_22 = arith.constant 0 : index
    %c0_23 = arith.constant 0 : index
    %c0_24 = arith.constant 0 : index
    %62 = vector.load %arg5[%c0_22, %c0_23, %c0_24] : memref<8x3x128xi32, #tpu.memory_space<vmem>>, vector<8x3x128xi32>
    tpu.vector_store %arg5[%c0_22, %c0_23, %c0_24], %61 {strides = array<i32>} : memref<8x3x128xi32, #tpu.memory_space<vmem>>, vector<8x3x128xi32>,
    return
  }
  func.func @transform_0(%arg0: i32) -> (i32, i32) {
    %c0_i32 = arith.constant 0 : i32
    %c0_i32_0 = arith.constant 0 : i32
    return %arg0, %c0_i32 : i32, i32
  }
  func.func @transform_1(%arg0: i32) -> (i32, i32) {
    %c0_i32 = arith.constant 0 : i32
    %c0_i32_0 = arith.constant 0 : i32
    %c0_i32_1 = arith.constant 0 : i32
    return %c0_i32, %c0_i32_0 : i32, i32
  }
  func.func @transform_2(%arg0: i32) -> (i32, i32) {
    %c0_i32 = arith.constant 0 : i32
    %c0_i32_0 = arith.constant 0 : i32
    %c0_i32_1 = arith.constant 0 : i32
    return %c0_i32, %c0_i32_0 : i32, i32
  }
  func.func @transform_3(%arg0: i32) -> (i32, i32) {
    %c0_i32 = arith.constant 0 : i32
    %c0_i32_0 = arith.constant 0 : i32
    return %arg0, %c0_i32 : i32, i32
  }
  func.func @transform_4(%arg0: i32) -> (i32, i32, i32) {
    %c0_i32 = arith.constant 0 : i32
    %c0_i32_0 = arith.constant 0 : i32
    %c0_i32_1 = arith.constant 0 : i32
    return %arg0, %c0_i32, %c0_i32_0 : i32, i32, i32
  }
}

</mosaic_0001>

<bundles_post_ra>
// kernel: tpu_custom_call.1
= control target key start
LH: loop header
LB: loop body
LE: loop exit
PB: predicated region body
PF: predicated region fallthrough
CT: control target
= control target key end

     0   :  { %10 = vsyncpa [#allocation3], 0  ;;  %s585_s0 = inlined_call_operand.hbm [shape: bf16[8,32], index: 0, kind: input, shape index: {}]   ;;  %s586_s1 = inlined_call_operand.hbm [shape: bf16[32,384], index: 1, kind: input, shape index: {}]   ;;  %s587_s2 = inlined_call_operand.vmem [shape: f32[1,384], index: 2, kind: input, shape index: {}]   ;;  %s588_s3 = inlined_call_operand.hbm [shape: f32[8,384], index: 3, kind: output, shape index: {0}]   ;;  %s589_s4 = inlined_call_operand.vmem [shape: s32[8,3,128], index: 4, kind: output, shape index: {1}]  }
   0x1   :  { %11 = vsyncpa [#allocation6], 0 }
   0x2   :  { %12 = vsyncpa [#allocation4], 0  ;;  %s460_s15 = smov [#allocation2]   ;;  %s461_s17 = smov [#allocation5]  }
   0x3   :  { %s19_s16 = sshll.u32 %s460_s15, 4  ;;  %s28_s18 = sshll.u32 %s461_s17, 4  ;;  %s20_s16 = int_to_ptr.vmem [resolvable:$true] %s19_s16  ;;  %s493_s18 = int_to_ptr.vmem [resolvable:$true] %s28_s18 }
   0x4   :  { %s388_s21 = scalar_lea.hbm %s585_s0, 64 }
   0x5   :  { %p389_p0 = scmp.ne.s32.totalorder %s585_s0, %s388_s21  ;;  %p392_p1 = scmp.lt.u32.totalorder %s388_s21, %s585_s0 }
   0x7   :  { %p394_p2 = pnand %p392_p1, %p389_p0 }
   0x9   :  { %397 = shalt.err (!%p394_p2)
}
   0xa   :  { %s398_s26 = scalar_lea.vmem %s20_s16, 64  ;;  %p403_p4 = scmp.lt.s32.totalorder %s20_s16, %s20_s16 }
   0xb   :  { %p399_p3 = scmp.ne.s32.totalorder %s20_s16, %s398_s26  ;;  %p404_p5 = scmp.lt.s32.totalorder %s398_s26, %s398_s26 }
   0xd   :  { %p405_p6 = por %p404_p5, %p403_p4 }
   0xf   :  { %p406_p7 = pnand %p405_p6, %p399_p3 }
  0x11   :  { %409 = shalt.err (!%p406_p7)
}
  0x12   :  { %22 = dma.hbm_to_vmem [thread:$0]  %s585_s0, 64, %s20_s16, [#allocation3]  }
  0x13   :  { %s410_s5 = scalar_lea.hbm %s586_s1, 768 }
  0x14   :  { %p411_p8 = scmp.ne.s32.totalorder %s586_s1, %s410_s5  ;;  %p414_p9 = scmp.lt.u32.totalorder %s410_s5, %s586_s1 }
  0x16   :  { %p416_p10 = pnand %p414_p9, %p411_p8 }
  0x18   :  { %419 = shalt.err (!%p416_p10)
}
  0x19   :  { %s420_s10 = scalar_lea.vmem %s493_s18, 768  ;;  %p425_p12 = scmp.lt.s32.totalorder %s493_s18, %s493_s18 }
  0x1a   :  { %p421_p11 = scmp.ne.s32.totalorder %s493_s18, %s420_s10  ;;  %p426_p13 = scmp.lt.s32.totalorder %s420_s10, %s420_s10 }
  0x1c   :  { %p427_p0 = por %p426_p13, %p425_p12 }
  0x1e   :  { %p428_p1 = pnand %p427_p0, %p421_p11 }
  0x20   :  { %431 = shalt.err (!%p428_p1)
}
  0x21   :  { %s462_s0 = smov 192   ;;  %s463_s11 = smov 12  }
  0x22   :  { %34 = dma.hbm_to_vmem [thread:$0]  %s586_s1, 768, %s493_s18, [#allocation6], %s462_s0, %s462_s0, %s463_s11  }
  0x23   :  { %454 = dma.done.wait [#allocation3], 64  }
  0x24   :  { %455 = vsyncadd [#allocation3], 4294967232 }
  0x25   :  { %456 = dma.done.wait [#allocation6], 768  }
  0x26   :  { %457 = vsyncadd [#allocation6], 4294966528  ;;  %v464_v0 = vmov 0.0   ;;  %v465_v1 = vmov 0   ;;  %vm466_vm0 = vmmov 0   ;;  %vm56_vm1 = vcmask 261120  }
  0x27   :  { %362 = vmatprep.subr.bf16.mxu1 %v464_v0  ;;  %129 = vmatprep.mubr.bf16.mxu0 %v465_v1  ;;  %v378_v2 = vld [vmem:[#allocation5 + $0x4] ss:$12 sps:$4 sm:$0xff]   ;;  %v380_v3 = vld [vmem:[#allocation5] ss:$12 sps:$4 sm:$0xff]   ;;  %v381_v4 = vld [vmem:[#allocation5 + $0x8] ss:$12 sps:$4 sm:$0xff]   ;;  %v182_v14 = vlaneseq }
  0x28   :  { %366 = vmatprep.mubr.msk.bf16.mxu1 %vm466_vm0, %v464_v0  ;;  %97 = vmatprep.subr.bf16.mxu0 %v378_v2  ;;  %v382_v5 = vld [vmem:[#allocation5 + $0x1c] ss:$12 sps:$4 sm:$0xff]   ;;  %v384_v6 = vld [vmem:[#allocation5 + $0x18] ss:$12 sps:$4 sm:$0xff]   ;;  %v385_v7 = vld [vmem:[#allocation5 + $0x20] ss:$12 sps:$4 sm:$0xff]  }
  0x29   :  { %98 = vmatpush1.bf16.msra.mxu0 %v380_v3  ;;  %363 = vmatpush3.bf16.msra.mxu1 %v381_v4  ;;  %v44_v8 = vld [vmem:[#allocation2] sm:$0xf]  ;;  %v524_v15 = vshrl.u32 %v182_v14, 7  ;;  %v204_v21 = vand.u32 127, %v182_v14  ;;  %vm263_vm9 = vcmask 7168   ;;  %vm265_vm10 = vcmask 15360  }
  0x2a   :  { %99 = vmatprep.subr.bf16.mxu0 %v382_v5  ;;  %364 = vmatprep.subr.bf16.mxu1 %v464_v0  ;;  %v54_v9 = vunpack.c.l.bf16 %v44_v8  ;;  %v53_v17 = vld [vmem:[%s587_s2] sm:$0x7]  ;;  %s467_s2 = smov [#allocation7]  }
  0x2b   :  { %v184_v16 = vsub.s32 0, %v524_v15  ;;  %v188_v18 = vsub.s32 1, %v524_v15  ;;  %v192_v19 = vsub.s32 2, %v524_v15  ;;  %vm205_vm2 = vcmp.lt.s32.totalorder %v204_v21, 8  ;;  %s337_s15 = sshll.u32 %s467_s2, 4  ;;  %s338_s15 = int_to_ptr.vmem [resolvable:$true] %s337_s15 }
  0x2c   :  { %v55_v10 = vmul.f32 %v54_v9, %v54_v9  ;;  %s432_s16 = scalar_lea.vmem %s338_s15, 384  ;;  %p437_p3 = scmp.lt.s32.totalorder %s338_s15, %s338_s15 }
  0x2d   :  { %100 = vmatpush1.bf16.msra.mxu0 %v384_v6  ;;  %365 = vmatpush3.bf16.msra.mxu1 %v385_v7  ;;  %v185_v22 = vrot.slane %v53_v17, %v184_v16  ;;  %v189_v24 = vrot.slane %v53_v17, %v188_v18  ;;  %v193_v25 = vrot.slane %v53_v17, %v192_v19  ;;  %p433_p2 = scmp.ne.s32.totalorder %s338_s15, %s432_s16  ;;  %p438_p4 = scmp.lt.s32.totalorder %s432_s16, %s432_s16 }
  0x2e   :  { %v57_v11 = vsel %vm56_vm1, %v55_v10, 0.0 }
  0x2f   :  { %58 = vadd.xlane.f32.xlu0 %v57_v11  ;;  %p439_p5 = por %p438_p4, %p437_p3 }
  0x30   :  { %357 = vmatmul.mubr.msk.bf16.vlgmr.msra.gmra.mrb[0].mxu0 %vm56_vm1, %v44_v8  ;;  %367 = vmatmul.mubr.msk.bf16.vlgmr.msra.gmra.mrb[0].mxu1 %vm56_vm1, %v44_v8 }
  0x31   :  { %p440_p6 = pnand %p439_p5, %p433_p2 }
  0xbc   :  { %v59_v12 = vpop.xlane.xlu0 %58 }
  0xbd   :  { %v60_v13 = vmax.f32 %v59_v12, 1e-24 }
  0xbf   :  { %386 = vrsqrt.f32 %v60_v13 }
  0xc9   :  { %v387_v20 = vpop.eup %386 }
 0x103   :  { %v131_v23 = vpop.f32.mrb[0].mxu0  ;;  %v172_v28 = vpop.f32.mrb[0].mxu1 }
 0x104   :  { %v178_v26 = vmul.f32 %v387_v20, %v131_v23  ;;  %v133_v27 = vpop.f32.mrb[1].mxu0  ;;  %v180_v30 = vmul.f32 %v387_v20, %v172_v28  ;;  %v368_v32 = vpop.f32.mrb[1].mxu1  ;;  %v290_v28 = vsub.s32 3, %v524_v15 }
 0x105   :  { %v179_v29 = vmul.f32 %v387_v20, %v133_v27  ;;  %v135_v31 = vpop.f32.mrb[2].mxu0  ;;  %v175_v34 = vpop.f32.mrb[2].mxu1 }
 0x106   :  { %v136_v33 = vpop.f32.mrb[3].mxu0  ;;  %v197_v35 = vmul.f32 %v185_v22, %v178_v26  ;;  %v369_v36 = vpop.f32.mrb[3].mxu1  ;;  %v199_v38 = vmul.f32 %v193_v25, %v180_v30  ;;  %v297_v25 = vsub.s32 4, %v524_v15 }
 0x107   :  { %v198_v37 = vmul.f32 %v189_v24, %v179_v29  ;;  %v311_v29 = vsub.s32 6, %v524_v15 }
 0x108   :  { %v206_v39 = vsel %vm205_vm2, %v197_v35, -inf  ;;  %200 = vst [vmem:[#allocation7] sm:$0xff] %v197_v35  ;;  %202 = vst [vmem:[#allocation7 + $0x10] sm:$0xff] %v199_v38  ;;  %v244_v41 = vsel %vm205_vm2, %v199_v38, -inf }
 0x109   :  { %207 = vmax.xlane.f32.xlu0 %v206_v39  ;;  %v225_v40 = vsel %vm205_vm2, %v198_v37, -inf  ;;  %201 = vst [vmem:[#allocation7 + $0x8] sm:$0xff] %v198_v37 }
 0x10a   :  { %226 = vmax.xlane.f32.xlu1 %v225_v40 }
 0x10e   :  { %245 = vmax.xlane.f32.xlu1 %v244_v41 }
 0x196   :  { %v208_v42 = vpop.xlane.xlu0 %207 }
 0x197   :  { %vm209_vm3 = vcmp.ge.f32.partialorder %v206_v39, %v208_v42  ;;  %v227_v43 = vpop.xlane.xlu1 %226 }
 0x198   :  { %v210_v44 = vsel %vm209_vm3, %v204_v21, 128  ;;  %vm228_vm4 = vcmp.ge.f32.partialorder %v225_v40, %v227_v43 }
 0x199   :  { %v229_v45 = vsel %vm228_vm4, %v204_v21, 128  ;;  %v212_v46 = vshra.s32 %v210_v44, 16  ;;  %v211_v54 = vand.u32 65535, %v210_v44 }
 0x19a   :  { %v231_v47 = vshra.s32 %v229_v45, 16  ;;  %v230_v55 = vand.u32 65535, %v229_v45 }
 0x19b   :  { %v246_v48 = vpop.xlane.xlu1 %245  ;;  %v214_v49 = vcvt.s32.f32 %v212_v46  ;;  %v213_v57 = vcvt.s32.f32 %v211_v54 }
 0x19c   :  { %vm247_vm5 = vcmp.ge.f32.partialorder %v244_v41, %v246_v48  ;;  %v233_v50 = vcvt.s32.f32 %v231_v47  ;;  %v232_v60 = vcvt.s32.f32 %v230_v55 }
 0x19d   :  { %v248_v51 = vsel %vm247_vm5, %v204_v21, 128  ;;  %215 = vmin.xlane.f32.xlu0 %v214_v49 }
 0x19e   :  { %234 = vmin.xlane.f32.xlu1 %v233_v50  ;;  %v250_v52 = vshra.s32 %v248_v51, 16  ;;  %v249_v58 = vand.u32 65535, %v248_v51 }
 0x1a0   :  { %v252_v53 = vcvt.s32.f32 %v250_v52  ;;  %v251_v0 = vcvt.s32.f32 %v249_v58 }
 0x1a2   :  { %253 = vmin.xlane.f32.xlu0 %v252_v53 }
 0x22a   :  { %v216_v56 = vpop.xlane.xlu0 %215 }
 0x22b   :  { %v235_v59 = vpop.xlane.xlu1 %234  ;;  %vm217_vm6 = vcmp.eq.f32.partialorder %v214_v49, %v216_v56  ;;  %v222_v2 = vcvt.f32.s32 %v216_v56 }
 0x22c   :  { %v218_v61 = vsel %vm217_vm6, %v213_v57, inf  ;;  %vm236_vm7 = vcmp.eq.f32.partialorder %v233_v50, %v235_v59  ;;  %v241_v3 = vcvt.f32.s32 %v235_v59 }
 0x22d   :  { %219 = vmin.xlane.f32.xlu1 %v218_v61  ;;  %v237_v62 = vsel %vm236_vm7, %v232_v60, inf  ;;  %v223_v9 = vshll.u32 %v222_v2, 16 }
 0x22e   :  { %238 = vmin.xlane.f32.xlu0 %v237_v62  ;;  %v242_v10 = vshll.u32 %v241_v3, 16 }
 0x22f   :  { %v254_v63 = vpop.xlane.xlu0 %253 }
 0x230   :  { %vm255_vm8 = vcmp.eq.f32.partialorder %v252_v53, %v254_v63  ;;  %v260_v7 = vcvt.f32.s32 %v254_v63 }
 0x231   :  { %v256_v1 = vsel %vm255_vm8, %v251_v0, inf }
 0x232   :  { %257 = vmin.xlane.f32.xlu1 %v256_v1  ;;  %v261_v14 = vshll.u32 %v260_v7, 16 }
 0x2ba   :  { %v220_v4 = vpop.xlane.xlu1 %219 }
 0x2bb   :  { %v221_v5 = vcvt.f32.s32 %v220_v4  ;;  %v239_v6 = vpop.xlane.xlu0 %238 }
 0x2bc   :  { %v240_v8 = vcvt.f32.s32 %v239_v6 }
 0x2bd   :  { %v224_v11 = vadd.s32 %v223_v9, %v221_v5 }
 0x2be   :  { %v243_v12 = vadd.s32 %v242_v10, %v240_v8 }
 0x2bf   :  { %v258_v13 = vpop.xlane.xlu1 %257 }
 0x2c0   :  { %v259_v17 = vcvt.f32.s32 %v258_v13  ;;  %v264_v21 = vsel %vm263_vm9, %v224_v11, %v243_v12 }
 0x2c2   :  { %v262_v20 = vadd.s32 %v261_v14, %v259_v17 }
 0x2c4   :  { %v266_v22 = vsel %vm265_vm10, %v264_v21, %v262_v20 }
 0x2c5   :  { %v277_v23 = vrot.slane %v266_v22, %v188_v18  ;;  %v270_v24 = vrot.slane %v266_v22, %v184_v16  ;;  %v284_v26 = vrot.slane %v266_v22, %v192_v19  ;;  %v298_v27 = vrot.slane %v266_v22, %v297_v25 }
 0x2c7   :  { %279 = vbcast.lane.b32.xlu1 %v277_v23, 256  ;;  %272 = vbcast.lane.b32.xlu0 %v270_v24, 256 }
 0x2cb   :  { %286 = vbcast.lane.b32.xlu1 %v284_v26, 256  ;;  %300 = vbcast.lane.b32.xlu0 %v298_v27, 256 }
 0x2cc   :  { %443 = shalt.err (!%p440_p6)
}
 0x2cd   :  { %s444_s19 = scalar_lea.hbm %s588_s3, 384 }
 0x2ce   :  { %p445_p7 = scmp.ne.s32.totalorder %s588_s3, %s444_s19  ;;  %p448_p8 = scmp.lt.u32.totalorder %s444_s19, %s588_s3 }
 0x2d0   :  { %p450_p9 = pnand %p448_p8, %p445_p7 }
 0x2d2   :  { %453 = shalt.err (!%p450_p9)
}
 0x2d3   :  { %340 = dma.vmem_to_hbm [thread:$0]  %s338_s15, 384, %s588_s3, [#allocation4]   ;;  %v291_v16 = vrot.slane %v266_v22, %v290_v28  ;;  %v312_v18 = vrot.slane %v266_v22, %v311_v29  ;;  %v304_v19 = vsub.s32 5, %v524_v15  ;;  %v318_v31 = vsub.s32 7, %v524_v15 }
 0x2d5   :  { %293 = vbcast.lane.b32.xlu1 %v291_v16, 256  ;;  %314 = vbcast.lane.b32.xlu0 %v312_v18, 256  ;;  %v305_v30 = vrot.slane %v266_v22, %v304_v19  ;;  %v319_v32 = vrot.slane %v266_v22, %v318_v31 }
 0x2d9   :  { %307 = vbcast.lane.b32.xlu1 %v305_v30, 256 }
 0x2dd   :  { %321 = vbcast.lane.b32.xlu1 %v319_v32, 256 }
 0x339   :  { %v280_v33 = vpop.permute.xlu1 %279  ;;  %v273_v34 = vpop.permute.xlu0 %272 }
 0x33a   :  { %324 = vst [vmem:[%s589_s4 + $0x4] sm:$0x7] %v280_v33  ;;  %323 = vst [vmem:[%s589_s4] sm:$0x7] %v273_v34 }
 0x33d   :  { %v287_v35 = vpop.permute.xlu1 %286  ;;  %v301_v36 = vpop.permute.xlu0 %300 }
 0x33e   :  { %325 = vst [vmem:[%s589_s4 + $0x8] sm:$0x7] %v287_v35  ;;  %327 = vst [vmem:[%s589_s4 + $0x10] sm:$0x7] %v301_v36 }
 0x347   :  { %v294_v15 = vpop.permute.xlu1 %293  ;;  %v315_v37 = vpop.permute.xlu0 %314 }
 0x348   :  { %326 = vst [vmem:[%s589_s4 + $0xc] sm:$0x7] %v294_v15  ;;  %329 = vst [vmem:[%s589_s4 + $0x18] sm:$0x7] %v315_v37 }
 0x34b   :  { %v308_v38 = vpop.permute.xlu1 %307 }
 0x34c   :  { %328 = vst [vmem:[%s589_s4 + $0x14] sm:$0x7] %v308_v38 }
 0x34f   :  { %v322_v39 = vpop.permute.xlu1 %321 }
 0x350   :  { %330 = vst [vmem:[%s589_s4 + $0x1c] sm:$0x7] %v322_v39 }
 0x351   :  { %458 = dma.done.wait [#allocation4], 384  }
 0x352   :  { %459 = vsyncadd [#allocation4], 4294966912 }
 0x353   :  { %348 = vsyncpa [#allocation3], 1 }
 0x354   :  { %349 = vsyncpa [#allocation6], 1 }
 0x355   :  { %350 = vsyncpa [#allocation4], 1 }

</bundles_post_ra>
